<compile_context>
chip_gen: v5e
topology: v5e:2x2
jax: 0.10.0
libtpu: 0.0.40
codegen_flags: <defaults>
</compile_context>

<pallas_src>
import jax
import jax.numpy as jnp
from jax.experimental import pallas as pl
from jax.experimental.pallas import tpu as pltpu


# ------------------------------ fused kernel -------------------------------- #

def _merge_conv_fused_kernel(
        x1_ref, x2_ref,                 # (1, H, W*C1), (1, H, W*C2)  bf16
        w1_ref, b1_ref,                 # (W*C1, W*Co) bf16, (1, W*Co) f32
        w2_ref, b2_ref,                 # (W*C2, W*Co) bf16, (1, W*Co) f32
        wm_ref,                         # (3, 2*W*Co, W*Co) bf16 banded merge weights
        sm_ref, bm_ref,                 # (1, W*Co) f32 folded BN scale / bias
        wo_ref, so_ref, bo_ref,         # merge2 band weights + folded BN
        o_ref,                          # (1, H, W*Co) f32
        ab_buf, m_buf):                 # VMEM row-halo scratch (f32)
    H = o_ref.shape[1]
    WCo = o_ref.shape[2]
    f32 = jnp.float32
    bf16 = jnp.bfloat16

    # Zero only the row halos (rows 0 and H+1) => SAME padding along H.
    # Interior rows are fully overwritten below, every grid step.
    ab_buf[0:1, :] = jnp.zeros((1, 2 * WCo), f32)
    ab_buf[H + 1:H + 2, :] = jnp.zeros((1, 2 * WCo), f32)
    m_buf[0:1, :] = jnp.zeros((1, WCo), f32)
    m_buf[H + 1:H + 2, :] = jnp.zeros((1, WCo), f32)

    # ---- stage 1: the two 1x1 convs (block-diagonal matmuls) ----
    # The concat([x1, x2]) is realized for free by writing the two results
    # into the two lane-halves of one scratch buffer (both lane-128 aligned).
    a = jnp.dot(x1_ref[0], w1_ref[...], preferred_element_type=f32) + b1_ref[...]
    b = jnp.dot(x2_ref[0], w2_ref[...], preferred_element_type=f32) + b2_ref[...]
    ab_buf[1:H + 1, :WCo] = a
    ab_buf[1:H + 1, WCo:] = b

    # ---- stage 2: merge = 3x3 conv over the concat + folded BN + ReLU ----
    acc = jnp.zeros((H, WCo), f32)
    for dy in range(3):                       # static unroll: 3 MXU matmuls (K=2*WCo)
        acc += jnp.dot(ab_buf[dy:dy + H, :].astype(bf16), wm_ref[dy],
                       preferred_element_type=f32)
    m_buf[1:H + 1, :] = jnp.maximum(acc * sm_ref[...] + bm_ref[...], 0.0)

    # ---- stage 3: merge2 = 3x3 conv + folded BN + ReLU ----
    acc2 = jnp.zeros((H, WCo), f32)
    for dy in range(3):                       # 3 MXU matmuls (K=WCo)
        acc2 += jnp.dot(m_buf[dy:dy + H, :].astype(bf16), wo_ref[dy],
                        preferred_element_type=f32)
    out = jnp.maximum(acc2 * so_ref[...] + bo_ref[...], 0.0)
    o_ref[0] = out.astype(o_ref.dtype)        # lane-dense (H, W*Co) store


# ------------------------- host-side weight preparation ---------------------- #

def _band_weights_3x3(w3, W):
    """w3: (3, 3, Ci, Co) HWIO  ->  (3, W*Ci, W*Co) banded matrices.

    For row tap dy the band matrix folds the 3 dx taps, the channel
    contraction and the SAME zero-padding along W into one MXU K dim:
      band[dy][(xin)*Ci + ci, (xout)*Co + co] = w3[dy, dx, ci, co],
      xin = xout + dx - 1  (out-of-range xin simply omitted == zero pad).
    """
    kh, kw, Ci, Co = w3.shape
    rows = []
    for dy in range(kh):
        acc = jnp.zeros((W, Ci, W, Co), w3.dtype)
        for dx in range(kw):
            shift = jnp.eye(W, k=1 - dx, dtype=w3.dtype)   # xin = xout + dx - 1
            acc = acc + jnp.einsum("pq,io->piqo", shift, w3[dy, dx])
        rows.append(acc.reshape(W * Ci, W * Co))
    return jnp.stack(rows, axis=0)


def _blockdiag_1x1(w, W):
    """w: (Ci, Co) 1x1 conv weight -> (W*Ci, W*Co) block-diagonal matrix."""
    return jnp.kron(jnp.eye(W, dtype=w.dtype), w)


def _tile_per_col(v, W):
    """(Co,) per-channel vector -> (1, W*Co) tiled across the flattened lanes."""
    return jnp.tile(v, W).reshape(1, W * v.shape[0])


def prepare_kernel_params(params, W):
    """One-time (amortized) conversion of module params to kernel layout."""
    Co = params["conv1_w"].shape[-1]
    bf16 = jnp.bfloat16
    wm = params["merge_w"]
    # Merge band weights laid out to match the [a || b] concat scratch layout:
    # K axis = [ a-half (W*Co) , b-half (W*Co) ].
    wm_band = jnp.concatenate(
        [_band_weights_3x3(wm[:, :, :Co, :], W),
         _band_weights_3x3(wm[:, :, Co:, :], W)], axis=1).astype(bf16)
    kp = {
        "W": W, "Co": Co,
        "w1": _blockdiag_1x1(params["conv1_w"], W).astype(bf16),
        "b1": _tile_per_col(params["conv1_b"], W),
        "w2": _blockdiag_1x1(params["conv2_w"], W).astype(bf16),
        "b2": _tile_per_col(params["conv2_b"], W),
        "wm": wm_band,
        "sm": _tile_per_col(params["merge_scale"], W),
        "bm": _tile_per_col(params["merge_bias"], W),
        "wo": _band_weights_3x3(params["merge2_w"], W).astype(bf16),
        "so": _tile_per_col(params["merge2_scale"], W),
        "bo": _tile_per_col(params["merge2_bias"], W),
    }
    return kp


# ------------------------------- forward pass -------------------------------- #

def merge_conv_forward(kp, x1_nchw, x2_nchw):
    B, C1, H, W = x1_nchw.shape
    C2 = x2_nchw.shape[1]
    Co = kp["Co"]
    assert W == kp["W"]
    WCo = W * Co
    bf16 = jnp.bfloat16

    # NCHW (PyTorch API) -> lane-flattened (B, H, W*C) bf16.  The transpose,
    # reshape and cast fuse into one boundary relayout per input in XLA.
    x1 = jnp.transpose(x1_nchw, (0, 2, 3, 1)).reshape(B, H, W * C1).astype(bf16)
    x2 = jnp.transpose(x2_nchw, (0, 2, 3, 1)).reshape(B, H, W * C2).astype(bf16)

    const2 = lambda b: (0, 0)
    const3 = lambda b: (0, 0, 0)

    out_flat = pl.pallas_call(
        _merge_conv_fused_kernel,
        out_shape=jax.ShapeDtypeStruct((B, H, WCo), jnp.float32),
        grid=(B,),
        in_specs=[
            pl.BlockSpec((1, H, W * C1), lambda b: (b, 0, 0)),
            pl.BlockSpec((1, H, W * C2), lambda b: (b, 0, 0)),
            pl.BlockSpec((W * C1, WCo), const2),
            pl.BlockSpec((1, WCo), const2),
            pl.BlockSpec((W * C2, WCo), const2),
            pl.BlockSpec((1, WCo), const2),
            pl.BlockSpec((3, 2 * WCo, WCo), const3),
            pl.BlockSpec((1, WCo), const2),
            pl.BlockSpec((1, WCo), const2),
            pl.BlockSpec((3, WCo, WCo), const3),
            pl.BlockSpec((1, WCo), const2),
            pl.BlockSpec((1, WCo), const2),
        ],
        out_specs=pl.BlockSpec((1, H, WCo), lambda b: (b, 0, 0)),
        scratch_shapes=[
            pltpu.VMEM((H + 2, 2 * WCo), jnp.float32),   # concat([conv1, conv2]) + row halo
            pltpu.VMEM((H + 2, WCo), jnp.float32),       # merge output + row halo
        ],
        compiler_params=pltpu.CompilerParams(
            dimension_semantics=("parallel",),
            vmem_limit_bytes=32 * 1024 * 1024,
        ),
    )(x1, x2, kp["w1"], kp["b1"], kp["w2"], kp["b2"],
      kp["wm"], kp["sm"], kp["bm"],
      kp["wo"], kp["so"], kp["bo"])

    # lane-dense (B, H, W*Co) -> NCHW
    return jnp.transpose(out_flat.reshape(B, H, W, Co), (0, 3, 1, 2))


# --------------------------- parameters / BN folding ------------------------- #

def init_params(key, inplan1, inplan2, outplan):
    ks = jax.random.split(key, 10)

    def uniform(k, shape, fan_in):
        bound = float(fan_in) ** -0.5
        return jax.random.uniform(k, shape, jnp.float32, -bound, bound)

    def bn(k, c):
        kg, kb, km, kv = jax.random.split(k, 4)
        gamma = jax.random.uniform(kg, (c,), jnp.float32, 0.5, 1.5)
        beta = 0.1 * jax.random.normal(kb, (c,), jnp.float32)
        mean = 0.1 * jax.random.normal(km, (c,), jnp.float32)
        var = jax.random.uniform(kv, (c,), jnp.float32, 0.5, 1.5)
        return gamma, beta, mean, var

    def fold(conv_bias, gamma, beta, mean, var, eps=1e-5):
        s = gamma / jnp.sqrt(var + eps)
        return s, beta + (conv_bias - mean) * s

    p = {}
    # conv1 / conv2: plain 1x1 convs with bias (no BN, no ReLU)
    p["conv1_w"] = uniform(ks[0], (inplan1, outplan), inplan1)
    p["conv1_b"] = uniform(ks[1], (outplan,), inplan1)
    p["conv2_w"] = uniform(ks[2], (inplan2, outplan), inplan2)
    p["conv2_b"] = uniform(ks[3], (outplan,), inplan2)
    # merge = BasicConv(2*outplan, outplan): 3x3 conv + BN + ReLU
    p["merge_w"] = uniform(ks[4], (3, 3, 2 * outplan, outplan), 9 * 2 * outplan)
    cb = uniform(ks[5], (outplan,), 9 * 2 * outplan)
    p["merge_scale"], p["merge_bias"] = fold(cb, *bn(ks[6], outplan))
    # merge2 = BasicConv(outplan, outplan): 3x3 conv + BN + ReLU
    p["merge2_w"] = uniform(ks[7], (3, 3, outplan, outplan), 9 * outplan)
    cb = uniform(ks[8], (outplan,), 9 * outplan)
    p["merge2_scale"], p["merge2_bias"] = fold(cb, *bn(ks[9], outplan))
    return p


# ------------------------------ pure-JAX reference --------------------------- #

def merge_conv_reference(params, x1_nchw, x2_nchw):
    dn = ("NHWC", "HWIO", "NHWC")

    def c3(x, w, s, b):
        y = jax.lax.conv_general_dilated(x, w, (1, 1), "SAME",
                                         dimension_numbers=dn)
        return jnp.maximum(y * s + b, 0.0)

    x1 = jnp.transpose(x1_nchw, (0, 2, 3, 1))
    x2 = jnp.transpose(x2_nchw, (0, 2, 3, 1))
    a = jax.lax.conv_general_dilated(
        x1, params["conv1_w"][None, None], (1, 1), "SAME",
        dimension_numbers=dn) + params["conv1_b"]
    b = jax.lax.conv_general_dilated(
        x2, params["conv2_w"][None, None], (1, 1), "SAME",
        dimension_numbers=dn) + params["conv2_b"]
    cat = jnp.concatenate([a, b], axis=-1)
    m = c3(cat, params["merge_w"], params["merge_scale"], params["merge_bias"])
    out = c3(m, params["merge2_w"], params["merge2_scale"], params["merge2_bias"])
    return jnp.transpose(out, (0, 3, 1, 2))   # Dropout2d is identity in eval


# ----------------------------------- main ------------------------------------ #

if __name__ == "__main__":
    key = jax.random.PRNGKey(0)
    B, H, W = 2, 16, 16
    inplan1, inplan2, outplan = 4, 6, 8        # W * outplan = 128 (lane dense)

    k1, k2, kparam = jax.random.split(key, 3)
    x1 = jax.random.normal(k1, (B, inplan1, H, W), jnp.float32)
    x2 = jax.random.normal(k2, (B, inplan2, H, W), jnp.float32)

    params = init_params(kparam, inplan1, inplan2, outplan)
    kp = prepare_kernel_params(params, W)      # one-time weight layout prep

    out = merge_conv_forward(kp, x1, x2)
    out = jax.block_until_ready(out)
    assert out.shape == (B, outplan, H, W), out.shape

    ref = merge_conv_reference(params, x1, x2)
    max_err = float(jnp.max(jnp.abs(out - ref)))
    # bf16 MXU path vs f32 reference -> loosened tolerance
    assert jnp.allclose(out, ref, atol=5e-2, rtol=5e-2), max_err

    print("KERNEL_OK")
</pallas_src>

<mosaic_0001>
module attributes {stable_mosaic.version = 11 : i64} {
  func.func @_merge_conv_fused_kernel(%arg0: i32, %arg1: memref<1x16x64xbf16, #tpu.memory_space<vmem>>, %arg2: memref<1x16x96xbf16, #tpu.memory_space<vmem>>, %arg3: memref<64x128xbf16, #tpu.memory_space<vmem>>, %arg4: memref<1x128xf32, #tpu.memory_space<vmem>>, %arg5: memref<96x128xbf16, #tpu.memory_space<vmem>>, %arg6: memref<1x128xf32, #tpu.memory_space<vmem>>, %arg7: memref<3x256x128xbf16, #tpu.memory_space<vmem>>, %arg8: memref<1x128xf32, #tpu.memory_space<vmem>>, %arg9: memref<1x128xf32, #tpu.memory_space<vmem>>, %arg10: memref<3x128x128xbf16, #tpu.memory_space<vmem>>, %arg11: memref<1x128xf32, #tpu.memory_space<vmem>>, %arg12: memref<1x128xf32, #tpu.memory_space<vmem>>, %arg13: memref<1x16x128xf32, #tpu.memory_space<vmem>>, %arg14: memref<18x256xf32, #tpu.memory_space<vmem>>, %arg15: memref<18x128xf32, #tpu.memory_space<vmem>>) attributes {dimension_semantics = [#tpu.dimension_semantics<parallel>], iteration_bounds = array<i64: 2>, scalar_prefetch = 0 : i64, scratch_operands = 2 : i64, tpu.core_type = #tpu.core_type<tc>, window_params = [{transform_indices = @transform_0, window_bounds = array<i64: 1, 16, 64>}, {transform_indices = @transform_1, window_bounds = array<i64: 1, 16, 96>}, {pipeline_mode = #tpu.pipeline_mode<synchronous>, transform_indices = @transform_2, window_bounds = array<i64: 64, 128>}, {pipeline_mode = #tpu.pipeline_mode<synchronous>, transform_indices = @transform_3, window_bounds = array<i64: 1, 128>}, {pipeline_mode = #tpu.pipeline_mode<synchronous>, transform_indices = @transform_4, window_bounds = array<i64: 96, 128>}, {pipeline_mode = #tpu.pipeline_mode<synchronous>, transform_indices = @transform_5, window_bounds = array<i64: 1, 128>}, {pipeline_mode = #tpu.pipeline_mode<synchronous>, transform_indices = @transform_6, window_bounds = array<i64: 3, 256, 128>}, {pipeline_mode = #tpu.pipeline_mode<synchronous>, transform_indices = @transform_7, window_bounds = array<i64: 1, 128>}, {pipeline_mode = #tpu.pipeline_mode<synchronous>, transform_indices = @transform_8, window_bounds = array<i64: 1, 128>}, {pipeline_mode = #tpu.pipeline_mode<synchronous>, transform_indices = @transform_9, window_bounds = array<i64: 3, 128, 128>}, {pipeline_mode = #tpu.pipeline_mode<synchronous>, transform_indices = @transform_10, window_bounds = array<i64: 1, 128>}, {pipeline_mode = #tpu.pipeline_mode<synchronous>, transform_indices = @transform_11, window_bounds = array<i64: 1, 128>}, {transform_indices = @transform_12, window_bounds = array<i64: 1, 16, 128>}]} {
    %cst = arith.constant 0.000000e+00 : f32
    %0 = vector.broadcast %cst : f32 to vector<1x256xf32>
    %c0 = arith.constant 0 : index
    %c0_0 = arith.constant 0 : index
    %1 = vector.load %arg14[%c0, %c0_0] : memref<18x256xf32, #tpu.memory_space<vmem>>, vector<1x256xf32>
    tpu.vector_store %arg14[%c0, %c0_0], %0 {strides = array<i32>} : memref<18x256xf32, #tpu.memory_space<vmem>>, vector<1x256xf32>,
    %cst_1 = arith.constant 0.000000e+00 : f32
    %2 = vector.broadcast %cst_1 : f32 to vector<1x256xf32>
    %c17 = arith.constant 17 : index
    %c0_2 = arith.constant 0 : index
    %3 = vector.load %arg14[%c17, %c0_2] : memref<18x256xf32, #tpu.memory_space<vmem>>, vector<1x256xf32>
    tpu.vector_store %arg14[%c17, %c0_2], %2 {strides = array<i32>} : memref<18x256xf32, #tpu.memory_space<vmem>>, vector<1x256xf32>,
    %cst_3 = arith.constant 0.000000e+00 : f32
    %4 = vector.broadcast %cst_3 : f32 to vector<1x128xf32>
    %c0_4 = arith.constant 0 : index
    %c0_5 = arith.constant 0 : index
    %5 = vector.load %arg15[%c0_4, %c0_5] : memref<18x128xf32, #tpu.memory_space<vmem>>, vector<1x128xf32>
    tpu.vector_store %arg15[%c0_4, %c0_5], %4 {strides = array<i32>} : memref<18x128xf32, #tpu.memory_space<vmem>>, vector<1x128xf32>,
    %cst_6 = arith.constant 0.000000e+00 : f32
    %6 = vector.broadcast %cst_6 : f32 to vector<1x128xf32>
    %c17_7 = arith.constant 17 : index
    %c0_8 = arith.constant 0 : index
    %7 = vector.load %arg15[%c17_7, %c0_8] : memref<18x128xf32, #tpu.memory_space<vmem>>, vector<1x128xf32>
    tpu.vector_store %arg15[%c17_7, %c0_8], %6 {strides = array<i32>} : memref<18x128xf32, #tpu.memory_space<vmem>>, vector<1x128xf32>,
    %c0_9 = arith.constant 0 : index
    %c0_10 = arith.constant 0 : index
    %c0_11 = arith.constant 0 : index
    %8 = vector.load %arg1[%c0_9, %c0_10, %c0_11] : memref<1x16x64xbf16, #tpu.memory_space<vmem>>, vector<1x16x64xbf16>
    %9 = vector.shape_cast %8 : vector<1x16x64xbf16> to vector<16x64xbf16>
    %c0_12 = arith.constant 0 : index
    %c0_13 = arith.constant 0 : index
    %10 = vector.load %arg3[%c0_12, %c0_13] : memref<64x128xbf16, #tpu.memory_space<vmem>>, vector<64x128xbf16>
    %cst_14 = arith.constant dense<0.000000e+00> : vector<16x128xf32>
    %11 = tpu.matmul %9, %10, %cst_14 {dimension_numbers = #tpu.dot_dimension_numbers<[1], [0], [0], [1], [0, 0, 1, 1], [], []>} : vector<16x64xbf16>, vector<64x128xbf16>, vector<16x128xf32> -> vector<16x128xf32>
    %c0_15 = arith.constant 0 : index
    %c0_16 = arith.constant 0 : index
    %12 = vector.load %arg4[%c0_15, %c0_16] : memref<1x128xf32, #tpu.memory_space<vmem>>, vector<1x128xf32>
    %13 = vector.broadcast %12 : vector<1x128xf32> to vector<16x128xf32>
    %14 = arith.addf %11, %13 : vector<16x128xf32>
    %c0_17 = arith.constant 0 : index
    %c0_18 = arith.constant 0 : index
    %c0_19 = arith.constant 0 : index
    %15 = vector.load %arg2[%c0_17, %c0_18, %c0_19] : memref<1x16x96xbf16, #tpu.memory_space<vmem>>, vector<1x16x96xbf16>
    %16 = vector.shape_cast %15 : vector<1x16x96xbf16> to vector<16x96xbf16>
    %c0_20 = arith.constant 0 : index
    %c0_21 = arith.constant 0 : index
    %17 = vector.load %arg5[%c0_20, %c0_21] : memref<96x128xbf16, #tpu.memory_space<vmem>>, vector<96x128xbf16>
    %cst_22 = arith.constant dense<0.000000e+00> : vector<16x128xf32>
    %18 = tpu.matmul %16, %17, %cst_22 {dimension_numbers = #tpu.dot_dimension_numbers<[1], [0], [0], [1], [0, 0, 1, 1], [], []>} : vector<16x96xbf16>, vector<96x128xbf16>, vector<16x128xf32> -> vector<16x128xf32>
    %c0_23 = arith.constant 0 : index
    %c0_24 = arith.constant 0 : index
    %19 = vector.load %arg6[%c0_23, %c0_24] : memref<1x128xf32, #tpu.memory_space<vmem>>, vector<1x128xf32>
    %20 = vector.broadcast %19 : vector<1x128xf32> to vector<16x128xf32>
    %21 = arith.addf %18, %20 : vector<16x128xf32>
    %c1 = arith.constant 1 : index
    %c0_25 = arith.constant 0 : index
    %22 = vector.load %arg14[%c1, %c0_25] : memref<18x256xf32, #tpu.memory_space<vmem>>, vector<16x128xf32>
    tpu.vector_store %arg14[%c1, %c0_25], %14 {strides = array<i32>} : memref<18x256xf32, #tpu.memory_space<vmem>>, vector<16x128xf32>,
    %c1_26 = arith.constant 1 : index
    %c128 = arith.constant 128 : index
    %23 = vector.load %arg14[%c1_26, %c128] : memref<18x256xf32, #tpu.memory_space<vmem>>, vector<16x128xf32>
    tpu.vector_store %arg14[%c1_26, %c128], %21 {strides = array<i32>} : memref<18x256xf32, #tpu.memory_space<vmem>>, vector<16x128xf32>,
    %cst_27 = arith.constant 0.000000e+00 : f32
    %24 = vector.broadcast %cst_27 : f32 to vector<16x128xf32>
    %c0_28 = arith.constant 0 : index
    %c0_29 = arith.constant 0 : index
    %25 = vector.load %arg14[%c0_28, %c0_29] : memref<18x256xf32, #tpu.memory_space<vmem>>, vector<16x256xf32>
    %26 = arith.truncf %25 : vector<16x256xf32> to vector<16x256xbf16>
    %c0_30 = arith.constant 0 : index
    %c0_31 = arith.constant 0 : index
    %c0_32 = arith.constant 0 : index
    %27 = vector.load %arg7[%c0_30, %c0_31, %c0_32] : memref<3x256x128xbf16, #tpu.memory_space<vmem>>, vector<1x256x128xbf16>
    %28 = vector.shape_cast %27 : vector<1x256x128xbf16> to vector<256x128xbf16>
    %cst_33 = arith.constant dense<0.000000e+00> : vector<16x128xf32>
    %29 = tpu.matmul %26, %28, %cst_33 {dimension_numbers = #tpu.dot_dimension_numbers<[1], [0], [0], [1], [0, 0, 1, 1], [], []>} : vector<16x256xbf16>, vector<256x128xbf16>, vector<16x128xf32> -> vector<16x128xf32>
    %30 = arith.addf %24, %29 : vector<16x128xf32>
    %c1_34 = arith.constant 1 : index
    %c0_35 = arith.constant 0 : index
    %31 = vector.load %arg14[%c1_34, %c0_35] : memref<18x256xf32, #tpu.memory_space<vmem>>, vector<16x256xf32>
    %32 = arith.truncf %31 : vector<16x256xf32> to vector<16x256xbf16>
    %c1_36 = arith.constant 1 : index
    %c0_37 = arith.constant 0 : index
    %c0_38 = arith.constant 0 : index
    %33 = vector.load %arg7[%c1_36, %c0_37, %c0_38] : memref<3x256x128xbf16, #tpu.memory_space<vmem>>, vector<1x256x128xbf16>
    %34 = vector.shape_cast %33 : vector<1x256x128xbf16> to vector<256x128xbf16>
    %cst_39 = arith.constant dense<0.000000e+00> : vector<16x128xf32>
    %35 = tpu.matmul %32, %34, %cst_39 {dimension_numbers = #tpu.dot_dimension_numbers<[1], [0], [0], [1], [0, 0, 1, 1], [], []>} : vector<16x256xbf16>, vector<256x128xbf16>, vector<16x128xf32> -> vector<16x128xf32>
    %36 = arith.addf %30, %35 : vector<16x128xf32>
    %c2 = arith.constant 2 : index
    %c0_40 = arith.constant 0 : index
    %37 = vector.load %arg14[%c2, %c0_40] : memref<18x256xf32, #tpu.memory_space<vmem>>, vector<16x256xf32>
    %38 = arith.truncf %37 : vector<16x256xf32> to vector<16x256xbf16>
    %c2_41 = arith.constant 2 : index
    %c0_42 = arith.constant 0 : index
    %c0_43 = arith.constant 0 : index
    %39 = vector.load %arg7[%c2_41, %c0_42, %c0_43] : memref<3x256x128xbf16, #tpu.memory_space<vmem>>, vector<1x256x128xbf16>
    %40 = vector.shape_cast %39 : vector<1x256x128xbf16> to vector<256x128xbf16>
    %cst_44 = arith.constant dense<0.000000e+00> : vector<16x128xf32>
    %41 = tpu.matmul %38, %40, %cst_44 {dimension_numbers = #tpu.dot_dimension_numbers<[1], [0], [0], [1], [0, 0, 1, 1], [], []>} : vector<16x256xbf16>, vector<256x128xbf16>, vector<16x128xf32> -> vector<16x128xf32>
    %42 = arith.addf %36, %41 : vector<16x128xf32>
    %c0_45 = arith.constant 0 : index
    %c0_46 = arith.constant 0 : index
    %43 = vector.load %arg8[%c0_45, %c0_46] : memref<1x128xf32, #tpu.memory_space<vmem>>, vector<1x128xf32>
    %44 = vector.broadcast %43 : vector<1x128xf32> to vector<16x128xf32>
    %45 = arith.mulf %42, %44 : vector<16x128xf32>
    %c0_47 = arith.constant 0 : index
    %c0_48 = arith.constant 0 : index
    %46 = vector.load %arg9[%c0_47, %c0_48] : memref<1x128xf32, #tpu.memory_space<vmem>>, vector<1x128xf32>
    %47 = vector.broadcast %46 : vector<1x128xf32> to vector<16x128xf32>
    %48 = arith.addf %45, %47 : vector<16x128xf32>
    %cst_49 = arith.constant 0.000000e+00 : f32
    %49 = vector.broadcast %cst_49 : f32 to vector<16x128xf32>
    %50 = arith.maximumf %48, %49 : vector<16x128xf32>
    %c1_50 = arith.constant 1 : index
    %c0_51 = arith.constant 0 : index
    %51 = vector.load %arg15[%c1_50, %c0_51] : memref<18x128xf32, #tpu.memory_space<vmem>>, vector<16x128xf32>
    tpu.vector_store %arg15[%c1_50, %c0_51], %50 {strides = array<i32>} : memref<18x128xf32, #tpu.memory_space<vmem>>, vector<16x128xf32>,
    %cst_52 = arith.constant 0.000000e+00 : f32
    %52 = vector.broadcast %cst_52 : f32 to vector<16x128xf32>
    %c0_53 = arith.constant 0 : index
    %c0_54 = arith.constant 0 : index
    %53 = vector.load %arg15[%c0_53, %c0_54] : memref<18x128xf32, #tpu.memory_space<vmem>>, vector<16x128xf32>
    %54 = arith.truncf %53 : vector<16x128xf32> to vector<16x128xbf16>
    %c0_55 = arith.constant 0 : index
    %c0_56 = arith.constant 0 : index
    %c0_57 = arith.constant 0 : index
    %55 = vector.load %arg10[%c0_55, %c0_56, %c0_57] : memref<3x128x128xbf16, #tpu.memory_space<vmem>>, vector<1x128x128xbf16>
    %56 = vector.shape_cast %55 : vector<1x128x128xbf16> to vector<128x128xbf16>
    %cst_58 = arith.constant dense<0.000000e+00> : vector<16x128xf32>
    %57 = tpu.matmul %54, %56, %cst_58 {dimension_numbers = #tpu.dot_dimension_numbers<[1], [0], [0], [1], [0, 0, 1, 1], [], []>} : vector<16x128xbf16>, vector<128x128xbf16>, vector<16x128xf32> -> vector<16x128xf32>
    %58 = arith.addf %52, %57 : vector<16x128xf32>
    %c1_59 = arith.constant 1 : index
    %c0_60 = arith.constant 0 : index
    %59 = vector.load %arg15[%c1_59, %c0_60] : memref<18x128xf32, #tpu.memory_space<vmem>>, vector<16x128xf32>
    %60 = arith.truncf %59 : vector<16x128xf32> to vector<16x128xbf16>
    %c1_61 = arith.constant 1 : index
    %c0_62 = arith.constant 0 : index
    %c0_63 = arith.constant 0 : index
    %61 = vector.load %arg10[%c1_61, %c0_62, %c0_63] : memref<3x128x128xbf16, #tpu.memory_space<vmem>>, vector<1x128x128xbf16>
    %62 = vector.shape_cast %61 : vector<1x128x128xbf16> to vector<128x128xbf16>
    %cst_64 = arith.constant dense<0.000000e+00> : vector<16x128xf32>
    %63 = tpu.matmul %60, %62, %cst_64 {dimension_numbers = #tpu.dot_dimension_numbers<[1], [0], [0], [1], [0, 0, 1, 1], [], []>} : vector<16x128xbf16>, vector<128x128xbf16>, vector<16x128xf32> -> vector<16x128xf32>
    %64 = arith.addf %58, %63 : vector<16x128xf32>
    %c2_65 = arith.constant 2 : index
    %c0_66 = arith.constant 0 : index
    %65 = vector.load %arg15[%c2_65, %c0_66] : memref<18x128xf32, #tpu.memory_space<vmem>>, vector<16x128xf32>
    %66 = arith.truncf %65 : vector<16x128xf32> to vector<16x128xbf16>
    %c2_67 = arith.constant 2 : index
    %c0_68 = arith.constant 0 : index
    %c0_69 = arith.constant 0 : index
    %67 = vector.load %arg10[%c2_67, %c0_68, %c0_69] : memref<3x128x128xbf16, #tpu.memory_space<vmem>>, vector<1x128x128xbf16>
    %68 = vector.shape_cast %67 : vector<1x128x128xbf16> to vector<128x128xbf16>
    %cst_70 = arith.constant dense<0.000000e+00> : vector<16x128xf32>
    %69 = tpu.matmul %66, %68, %cst_70 {dimension_numbers = #tpu.dot_dimension_numbers<[1], [0], [0], [1], [0, 0, 1, 1], [], []>} : vector<16x128xbf16>, vector<128x128xbf16>, vector<16x128xf32> -> vector<16x128xf32>
    %70 = arith.addf %64, %69 : vector<16x128xf32>
    %c0_71 = arith.constant 0 : index
    %c0_72 = arith.constant 0 : index
    %71 = vector.load %arg11[%c0_71, %c0_72] : memref<1x128xf32, #tpu.memory_space<vmem>>, vector<1x128xf32>
    %72 = vector.broadcast %71 : vector<1x128xf32> to vector<16x128xf32>
    %73 = arith.mulf %70, %72 : vector<16x128xf32>
    %c0_73 = arith.constant 0 : index
    %c0_74 = arith.constant 0 : index
    %74 = vector.load %arg12[%c0_73, %c0_74] : memref<1x128xf32, #tpu.memory_space<vmem>>, vector<1x128xf32>
    %75 = vector.broadcast %74 : vector<1x128xf32> to vector<16x128xf32>
    %76 = arith.addf %73, %75 : vector<16x128xf32>
    %cst_75 = arith.constant 0.000000e+00 : f32
    %77 = vector.broadcast %cst_75 : f32 to vector<16x128xf32>
    %78 = arith.maximumf %76, %77 : vector<16x128xf32>
    %c0_76 = arith.constant 0 : index
    %c0_77 = arith.constant 0 : index
    %c0_78 = arith.constant 0 : index
    %79 = vector.load %arg13[%c0_76, %c0_77, %c0_78] : memref<1x16x128xf32, #tpu.memory_space<vmem>>, vector<1x16x128xf32>
    %80 = vector.shape_cast %79 : vector<1x16x128xf32> to vector<16x128xf32>
    %81 = vector.shape_cast %78 : vector<16x128xf32> to vector<1x16x128xf32>
    tpu.vector_store %arg13[%c0_76, %c0_77, %c0_78], %81 {strides = array<i32>} : memref<1x16x128xf32, #tpu.memory_space<vmem>>, vector<1x16x128xf32>,
    return
  }
  func.func @transform_0(%arg0: i32) -> (i32, i32, i32) {
    %c0_i32 = arith.constant 0 : i32
    %c0_i32_0 = arith.constant 0 : i32
    %c0_i32_1 = arith.constant 0 : i32
    return %arg0, %c0_i32, %c0_i32_0 : i32, i32, i32
  }
  func.func @transform_1(%arg0: i32) -> (i32, i32, i32) {
    %c0_i32 = arith.constant 0 : i32
    %c0_i32_0 = arith.constant 0 : i32
    %c0_i32_1 = arith.constant 0 : i32
    return %arg0, %c0_i32, %c0_i32_0 : i32, i32, i32
  }
  func.func @transform_2(%arg0: i32) -> (i32, i32) {
    %c0_i32 = arith.constant 0 : i32
    %c0_i32_0 = arith.constant 0 : i32
    %c0_i32_1 = arith.constant 0 : i32
    return %c0_i32, %c0_i32_0 : i32, i32
  }
  func.func @transform_3(%arg0: i32) -> (i32, i32) {
    %c0_i32 = arith.constant 0 : i32
    %c0_i32_0 = arith.constant 0 : i32
    %c0_i32_1 = arith.constant 0 : i32
    return %c0_i32, %c0_i32_0 : i32, i32
  }
  func.func @transform_4(%arg0: i32) -> (i32, i32) {
    %c0_i32 = arith.constant 0 : i32
    %c0_i32_0 = arith.constant 0 : i32
    %c0_i32_1 = arith.constant 0 : i32
    return %c0_i32, %c0_i32_0 : i32, i32
  }
  func.func @transform_5(%arg0: i32) -> (i32, i32) {
    %c0_i32 = arith.constant 0 : i32
    %c0_i32_0 = arith.constant 0 : i32
    %c0_i32_1 = arith.constant 0 : i32
    return %c0_i32, %c0_i32_0 : i32, i32
  }
  func.func @transform_6(%arg0: i32) -> (i32, i32, i32) {
    %c0_i32 = arith.constant 0 : i32
    %c0_i32_0 = arith.constant 0 : i32
    %c0_i32_1 = arith.constant 0 : i32
    %c0_i32_2 = arith.constant 0 : i32
    return %c0_i32, %c0_i32_0, %c0_i32_1 : i32, i32, i32
  }
  func.func @transform_7(%arg0: i32) -> (i32, i32) {
    %c0_i32 = arith.constant 0 : i32
    %c0_i32_0 = arith.constant 0 : i32
    %c0_i32_1 = arith.constant 0 : i32
    return %c0_i32, %c0_i32_0 : i32, i32
  }
  func.func @transform_8(%arg0: i32) -> (i32, i32) {
    %c0_i32 = arith.constant 0 : i32
    %c0_i32_0 = arith.constant 0 : i32
    %c0_i32_1 = arith.constant 0 : i32
    return %c0_i32, %c0_i32_0 : i32, i32
  }
  func.func @transform_9(%arg0: i32) -> (i32, i32, i32) {
    %c0_i32 = arith.constant 0 : i32
    %c0_i32_0 = arith.constant 0 : i32
    %c0_i32_1 = arith.constant 0 : i32
    %c0_i32_2 = arith.constant 0 : i32
    return %c0_i32, %c0_i32_0, %c0_i32_1 : i32, i32, i32
  }
  func.func @transform_10(%arg0: i32) -> (i32, i32) {
    %c0_i32 = arith.constant 0 : i32
    %c0_i32_0 = arith.constant 0 : i32
    %c0_i32_1 = arith.constant 0 : i32
    return %c0_i32, %c0_i32_0 : i32, i32
  }
  func.func @transform_11(%arg0: i32) -> (i32, i32) {
    %c0_i32 = arith.constant 0 : i32
    %c0_i32_0 = arith.constant 0 : i32
    %c0_i32_1 = arith.constant 0 : i32
    return %c0_i32, %c0_i32_0 : i32, i32
  }
  func.func @transform_12(%arg0: i32) -> (i32, i32, i32) {
    %c0_i32 = arith.constant 0 : i32
    %c0_i32_0 = arith.constant 0 : i32
    %c0_i32_1 = arith.constant 0 : i32
    return %arg0, %c0_i32, %c0_i32_0 : i32, i32, i32
  }
}

</mosaic_0001>

<bundles_post_ra>
// kernel: tpu_custom_call.1
= control target key start
LH: loop header
LB: loop body
LE: loop exit
PB: predicated region body
PF: predicated region fallthrough
CT: control target
= control target key end

     0   :  { %s2811_s0 = inlined_call_operand.hbm [shape: bf16[2,16,64], index: 0, kind: input, shape index: {}]   ;;  %s2812_s1 = inlined_call_operand.hbm [shape: bf16[2,16,96], index: 1, kind: input, shape index: {}]   ;;  %s2813_s2 = inlined_call_operand.hbm [shape: bf16[64,128], index: 2, kind: input, shape index: {}]   ;;  %s2814_s3 = inlined_call_operand.vmem [shape: f32[1,128], index: 3, kind: input, shape index: {}]   ;;  %s2815_s4 = inlined_call_operand.hbm [shape: bf16[96,128], index: 4, kind: input, shape index: {}]   ;;  %s2816_s5 = inlined_call_operand.vmem [shape: f32[1,128], index: 5, kind: input, shape index: {}]   ;;  %s2817_s6 = inlined_call_operand.hbm [shape: bf16[3,256,128], index: 6, kind: input, shape index: {}]   ;;  %s2818_s7 = inlined_call_operand.vmem [shape: f32[1,128], index: 7, kind: input, shape index: {}]   ;;  %s2819_s8 = inlined_call_operand.vmem [shape: f32[1,128], index: 8, kind: input, shape index: {}]   ;;  %s2820_s9 = inlined_call_operand.hbm [shape: bf16[3,128,128], index: 9, kind: input, shape index: {}]   ;;  %s2821_s10 = inlined_call_operand.vmem [shape: f32[1,128], index: 10, kind: input, shape index: {}]   ;;  %s2822_s11 = inlined_call_operand.vmem [shape: f32[1,128], index: 11, kind: input, shape index: {}]   ;;  %s2823_s12 = inlined_call_operand.hbm [shape: f32[2,16,128], index: 12, kind: output, shape index: {}]  }
   0x1   :  { %2834 = sst [smem:[#allocation27_spill]] %s2811_s0 }
   0x2   :  { %2835 = sst [smem:[#allocation28_spill]] %s2813_s2 }
   0x3   :  { %2836 = sst [smem:[#allocation29_spill]] %s2815_s4 }
   0x4   :  { %2837 = sst [smem:[#allocation30_spill]] %s2817_s6 }
   0x5   :  { %2838 = sst [smem:[#allocation31_spill]] %s2820_s9 }
   0x6   :  { %2839 = sst [smem:[#allocation32_spill]] %s2823_s12 }
   0x7   :  { %17 = vsyncpa [#allocation5], 0 }
   0x8   :  { %19 = vsyncpa [#allocation5 + $0x1], 0 }
   0x9   :  { %20 = vsyncpa [#allocation8], 0 }
   0xa   :  { %22 = vsyncpa [#allocation8 + $0x1], 0 }
   0xb   :  { %23 = vsyncpa [#allocation11], 0 }
   0xc   :  { %24 = vsyncpa [#allocation14], 0 }
   0xd   :  { %25 = vsyncpa [#allocation6], 0 }
   0xe   :  { %27 = vsyncpa [#allocation6 + $0x1], 0  ;;  %s2570_s21 = smov 0   ;;  %s2572_s22 = smov 0  }
   0xf   :  { %s2574_s23 = smov 0   ;;  %s2576_s24 = smov 0  }
  0x10 LB: > { %2840 = sst [smem:[#allocation22_spill]] %s2482_s21  ;;  %s2591_s25 = sadd.s32 4294967295, %s2494_s24   ;;  %s2494_s24 = sphi %s2576_s24, %s2862_s24   ;;  %s2490_s23 = sphi %s2574_s23, %s2864_s23   ;;  %s2486_s22 = sphi %s2572_s22, %s2866_s22   ;;  %s2482_s21 = sphi %s2570_s21, %s2865_s21  }
  0x11   : > { %2841 = sst [smem:[#allocation23_spill]] %s2490_s23  ;;  %s1678_s26 = sadd.s32 4294967294, %s2494_s24  }
  0x12   : > { %p53_p0 = scmp.ne.s32.totalorder %s2486_s22, %s2482_s21  ;;  %p54_p1 = scmp.eq.s32.totalorder %s2591_s25, 0 }
  0x13   : > { %p313_p2 = scmp.eq.s32.totalorder %s2591_s25, 1  ;;  %p319_p3 = scmp.eq.s32.totalorder %s1678_s26, 1 }
  0x14   : > { %p2600_p4 = por %p54_p1, %p53_p0  ;;  %p1679_p5 = scmp.ge.s32.totalorder %s2494_s24, 1 }
  0x15   : > { %p2605_p6 = por %p319_p3, %p53_p0  ;;  %p326_p7 = scmp.lt.s32.totalorder %s2494_s24, 3 }
  0x16   : > { %s2845_s2 = sld [smem:[#allocation28_spill]]  ;;  %s2496_s15 = smov [#allocation9]  }
  0x17   : > { %s2843_s28 = scalar_select %p2605_p6, 1, 0 }
  0x18   : > { %p2613_p8 = pnand %p1679_p5, %p326_p7  ;;  %s339_s16 = sshll.u32 %s2496_s15, 4  ;;  %s340_s16 = int_to_ptr.vmem [resolvable:$true] %s339_s16 }
  0x19   : > { %2844 = sst [smem:[#allocation24_spill]] %s2843_s28  ;;  %s2826_s26 = smov 64  }
  0x1a   : > { %p2151_p9 = pneg %p2613_p8  ;;  %s2848_s4 = sld [smem:[#allocation29_spill]] }
  0x1b   : > { %s2828_s29 = smov 4   ;;  %s2499_s30 = smov [#allocation10]  }
  0x1c   : > { %s337_s13 = sshll.u32 %s2845_s2, 4  ;;  %p2621_p10 = pnand %p2151_p9, %p54_p1  ;;  %s338_s13 = int_to_ptr.hbm [resolvable:$true] %s337_s13 }
  0x1d   : > { %s356_s15 = sshll.u32 %s2499_s30, 4  ;;  %s2849_s6 = sld [smem:[#allocation30_spill]]  ;;  %s357_s15 = int_to_ptr.vmem [resolvable:$true] %s356_s15 }
  0x1e   : > { %2154 = dma.hbm_to_vmem [thread:$0]  (!%p2621_p10), %s338_s13, 512, %s340_s16, [#allocation8], %s2826_s26, %s2826_s26, %s2828_s29  }
  0x1f   : > { %s2850_s9 = sld [smem:[#allocation31_spill]]  ;;  %s2500_s19 = smov [#allocation12]  }
  0x20   : > { %s354_s20 = sshll.u32 %s2848_s4, 4  ;;  %s373_s2 = sshll.u32 %s2500_s19, 4  ;;  %s355_s20 = int_to_ptr.hbm [resolvable:$true] %s354_s20  ;;  %s374_s2 = int_to_ptr.vmem [resolvable:$true] %s373_s2 }
  0x21   : > { %2157 = dma.hbm_to_vmem [thread:$0]  (!%p2621_p10), %s355_s20, 768, %s357_s15, [#allocation11], %s2826_s26, %s2826_s26, %s2828_s29  }
  0x22   : > { %s2501_s28 = smov [#allocation13]   ;;  %s2656_s30 = sadd.s32 1, %s2494_s24  }
  0x23   : > { %s371_s21 = sshll.u32 %s2849_s6, 4  ;;  %s393_s20 = sshll.u32 %s2501_s28, 4  ;;  %s372_s21 = int_to_ptr.hbm [resolvable:$true] %s371_s21  ;;  %s394_s20 = int_to_ptr.vmem [resolvable:$true] %s393_s20 }
  0x24   : > { %2160 = dma.hbm_to_vmem [thread:$0]  (!%p2621_p10), %s372_s21, 6144, %s374_s2, [#allocation11], %s2826_s26, %s2826_s26, %s2828_s29  }
  0x25   : > { %s391_s18 = sshll.u32 %s2850_s9, 4  ;;  %2851 = sst [smem:[#allocation25_spill]] %s2656_s30  ;;  %s392_s18 = int_to_ptr.hbm [resolvable:$true] %s391_s18 }
  0x26   : > { %2163 = dma.hbm_to_vmem [thread:$0]  (!%p2621_p10), %s392_s18, 3072, %s394_s20, [#allocation14], %s2826_s26, %s2826_s26, %s2828_s29  }
  0x27   : > { %s40_s15 = sadd.s32 1, %s2490_s23  ;;  %s37_s13 = ssub.s32 %s2494_s24, %s2656_s30 }
  0x28   : > { %p47_p12 = scmp.ne.s32.totalorder %s2490_s23, %s2486_s22  ;;  %p38_p13 = scmp.eq.s32.totalorder %s37_s13, 0 }
  0x29   : > { %p48_p0 = scmp.eq.s32.totalorder %s2494_s24, 0  ;;  %p2179_p5 = scmp.lt.s32.totalorder %s2494_s24, 2 }
  0x2a   : > { %p2666_p3 = por %p313_p2, %p47_p12  ;;  %s413_s17 = sand.u32 1, %s2490_s23  }
  0x2b   : > { %s2672_s16 = scalar_select %p38_p13, %s2490_s23, %s40_s15  }
  0x2c   : > { %p49_p7 = por %p48_p0, %p47_p12  ;;  %s2675_s19 = sshll.u32 %s413_s17, 3 }
  0x2d   : > { %2853 = sst [smem:[#allocation26_spill]] %s2672_s16  ;;  %s2042_s18 = sshll.u32 %s2494_s24, 3 }
  0x2e   : > { %s2854_s0 = sld [smem:[#allocation27_spill]]  ;;  %s417_s13 = scalar_lea.vmem [#allocation4], %s2675_s19 }
  0x2f   : > { %s425_s26 = sshll.u32 %s417_s13, 4  ;;  %p2682_p2 = pnand %p2179_p5, %p49_p7  ;;  %s426_s26 = int_to_ptr.vmem [resolvable:$true] %s425_s26 }
  0x30   : > { %s444_s9 = scalar_lea.hbm %s2812_s1, %s2042_s18  ;;  %s414_s23 = scalar_lea.sflag [#allocation5], %s413_s17 }
  0x31   : > { %s445_s16 = sshll.u32 %s444_s9, 4  ;;  %p2356_p10 = pneg %p2682_p2  ;;  %s446_s16 = int_to_ptr.hbm [resolvable:$true] %s445_s16 }
  0x34   : > { %s422_s20 = scalar_lea.hbm %s2854_s0, %s2042_s18  ;;  %s2359_s13 = scalar_lea.hbm %s2854_s0, 16 }
  0x35   : > { %s423_s29 = sshll.u32 %s422_s20, 4  ;;  %s424_s29 = int_to_ptr.hbm [resolvable:$true] %s423_s29 }
  0x36   : > { %s2352_s30 = sshra.s32 %s424_s29, 4  ;;  %s2353_s30 = int_to_ptr.hbm [resolvable:$true] %s2352_s30 }
  0x37   : > { %s2354_s2 = scalar_lea.hbm %s2353_s30, 8  ;;  %p2360_p0 = scmp.lt.s32.totalorder %s2353_s30, %s2854_s0 }
  0x38   : > { %p2355_p9 = scmp.ne.s32.totalorder %s2353_s30, %s2354_s2  ;;  %p2361_p5 = scmp.lt.s32.totalorder %s2359_s13, %s2354_s2 }
  0x3a   : > { %p2357_p12 = pnand %p2356_p10, %p2355_p9  ;;  %p2362_p7 = por %p2361_p5, %p2360_p0 }
  0x3c   : > { %p2358_p13 = pneg %p2357_p12 }
  0x3e   : > { %p2363_p11 = pnand %p2362_p7, %p2358_p13 }
  0x40   : > { %2366 = shalt.err (!%p2363_p11)
}
  0x41   : > { %s2856_s9 = smov 4   ;;  %s2857_s17 = smov 64  }
  0x42   : > { %2167 = dma.hbm_to_vmem [thread:$0]  (!%p2682_p2), %s424_s29, 128, %s426_s26, %s414_s23, %s2857_s17, %s2857_s17, %s2856_s9  }
  0x43   : > { %s439_s18 = scalar_lea.vmem [#allocation7], %s2675_s19  ;;  %s435_s20 = sand.u32 1, %s2494_s24  }
  0x44   : > { %s447_s28 = sshll.u32 %s439_s18, 4  ;;  %s436_s6 = scalar_lea.sflag [#allocation8], %s435_s20  ;;  %s448_s28 = int_to_ptr.vmem [resolvable:$true] %s447_s28 }
  0x45   : > { %s2382_s30 = sshra.s32 %s446_s16, 4  ;;  %s2389_s0 = scalar_lea.hbm %s2812_s1, 16  ;;  %s2383_s30 = int_to_ptr.hbm [resolvable:$true] %s2382_s30 }
  0x46   : > { %s2384_s2 = scalar_lea.hbm %s2383_s30, 8  ;;  %p2390_p13 = scmp.lt.s32.totalorder %s2383_s30, %s2812_s1 }
  0x47   : > { %p2385_p9 = scmp.ne.s32.totalorder %s2383_s30, %s2384_s2  ;;  %p2391_p0 = scmp.lt.s32.totalorder %s2389_s0, %s2384_s2 }
  0x49   : > { %p2387_p11 = pnand %p2385_p9, %p2356_p10  ;;  %p2392_p5 = por %p2391_p0, %p2390_p13 }
  0x4b   : > { %p2388_p12 = pneg %p2387_p11 }
  0x4d   : > { %p2393_p7 = pnand %p2392_p5, %p2388_p12 }
  0x4f   : > { %2396 = shalt.err (!%p2393_p7)
}
  0x50   : > { %2170 = dma.hbm_to_vmem [thread:$0]  (!%p2682_p2), %s446_s16, 128, %s448_s28, %s436_s6, %s2857_s17, %s2857_s17, %s2856_s9  }
  0x51   : > { %459 = sbr.rel (%p2613_p8) target bundleno = 602 (0x25a), region = 68  ;;  %s2724_s26 = sand.u32 (!%p2613_p8), 1, %s2486_s22  }
  0x52   : > { %s1692_s12 = sshll.u32 (!%p2613_p8), %s2724_s26, 3  ;;  %s462_s0 = scalar_lea.sflag (!%p2613_p8), [#allocation5], %s2724_s26 }
  0x53   : > { %s2728_s29 = scalar_lea.vmem (!%p2613_p8), [#allocation4], %s1692_s12 }
  0x56   : > { %2457 = dma.done.wait (%p2600_p4), %s462_s0, 128  }
  0x57   : > { %2459 = vsyncadd (%p2600_p4), %s462_s0, 4294967168  ;;  %s471_s4 = sand.u32 1, %s2591_s25   ;;  %s2735_s16 = scalar_lea.vmem [#allocation7], %s1692_s12 }
  0x58   : > { %s472_s14 = scalar_lea.sflag [#allocation8], %s471_s4 }
  0x59   : > { %2461 = dma.done.wait (%p2600_p4), %s472_s14, 128  }
  0x5a   : > { %2463 = vsyncadd (%p2600_p4), %s472_s14, 4294967168 }
  0x5b   : > { %2465 = dma.done.wait (%p54_p1), [#allocation8], 512  }
  0x5c   : > { %2467 = vsyncadd (%p54_p1), [#allocation8], 4294966784 }
  0x5d   : > { %2469 = dma.done.wait (%p54_p1), [#allocation11], 6912  }
  0x5e   : > { %2471 = vsyncadd (%p54_p1), [#allocation11], 4294960384 }
  0x5f   : > { %2473 = dma.done.wait (%p54_p1), [#allocation14], 3072  }
  0x60   : > { %2475 = vsyncadd (%p54_p1), [#allocation14], 4294964224  ;;  %v2048_v0 = vld [vmem:[#allocation9 + $0x18] sm:$0xff]  ;;  %v2055_v1 = vld [vmem:[#allocation10 + $0x28] sm:$0xff]  ;;  %vm597_vm0 = vcmask 523264   ;;  %vm674_vm1 = vcmask 785408   ;;  %v543_v32 = vlaneseq }
  0x61   : > { %605 = vmatpush.bf16.msra.mxu0 %v2048_v0  ;;  %680 = vmatpush.bf16.msra.mxu1 %v2055_v1  ;;  %v2047_v2 = vld [vmem:[#allocation9 + $0x10] sm:$0xff]  ;;  %v2054_v3 = vld [vmem:[#allocation10 + $0x20] sm:$0xff]  ;;  %v2079_v4 = vld [vmem:[#allocation12 + $0xb8] sm:$0xff]  ;;  %v2502_v35 = vmov 0.0   ;;  %vm694_vm3 = vcmask 1040384   ;;  %vm1114_vm5 = vcmask 1046528  }
  0x62   : > { %v2046_v5 = vld [vmem:[#allocation9 + $0x8] sm:$0xff]  ;;  %v2053_v7 = vld [vmem:[#allocation10 + $0x18] sm:$0xff]  ;;  %v2078_v8 = vld [vmem:[#allocation12 + $0xb0] sm:$0xff]  ;;  %917 = vmatpush.bf16.msra.mxu2 %v2079_v4  ;;  %vm545_vm2 = vcmp.lt.s32.totalorder %v543_v32, 256  ;;  %552 = vst [vmem:[#allocation3] sm:$0x1] %v2502_v35 }
  0x63   : > { %v2087_v6 = vld [vmem:[#allocation12 + $0xf8] sm:$0xff]  ;;  %v2086_v9 = vld [vmem:[#allocation12 + $0xf0] sm:$0xff]  ;;  %v2052_v11 = vld [vmem:[#allocation10 + $0x10] sm:$0xff]  ;;  %547 = vst.msk [vmem:[#allocation2] ss:$8 sm:$0x3] %vm545_vm2, %v2502_v35 }
  0x64   : > { %931 = vmatpush.bf16.msra.mxu3 %v2087_v6  ;;  %v2045_v10 = vld [vmem:[#allocation9] sm:$0xff]  ;;  %v2063_v12 = vld [vmem:[#allocation12 + $0x38] sm:$0xff]  ;;  %v2077_v13 = vld [vmem:[#allocation12 + $0xa8] sm:$0xff]  ;;  %550 = vst.msk [vmem:[#allocation2 + $0x21] ss:$8 sm:$0x3] %vm545_vm2, %v2502_v35 }
  0x65   : > { %606 = vmatpush.bf16.msra.mxu0 %v2047_v2  ;;  %681 = vmatpush.bf16.msra.mxu1 %v2054_v3  ;;  %v2044_v14 = vld [vmem:[%s2728_s29] sm:$0xff]  ;;  %v2076_v17 = vld [vmem:[#allocation12 + $0xa0] sm:$0xff]  ;;  %v2061_v20 = vld [vmem:[#allocation12 + $0x28] sm:$0xff]  ;;  %553 = vst [vmem:[#allocation3 + $0x11] sm:$0x1] %v2502_v35  ;;  %s1698_s23 = sshll.u32 %s2724_s26, 4 }
  0x66   : > { %918 = vmatpush.bf16.msra.mxu2 %v2078_v8  ;;  %v2051_v15 = vld [vmem:[#allocation10 + $0x8] sm:$0xff]  ;;  %v2062_v16 = vld [vmem:[#allocation12 + $0x30] sm:$0xff]  ;;  %v2049_v19 = vld [vmem:[%s2735_s16] sm:$0xff]  ;;  %vm794_vm4 = vsmask.f32 7424  ;;  %s2128_s12 = sshll.u32 %s2591_s25, 4 }
  0x67   : > { %v2050_v18 = vld [vmem:[#allocation10] sm:$0xff]  ;;  %v2071_v21 = vld [vmem:[#allocation12 + $0x78] sm:$0xff]  ;;  %v2060_v22 = vld [vmem:[#allocation12 + $0x20] sm:$0xff]  ;;  %s541_s0 = scalar_lea.vmem [#allocation15], %s1698_s23  ;;  %s2858_s14 = sld [smem:[#allocation32_spill]] }
  0x68   : > { %932 = vmatpush.bf16.msra.mxu3 %v2086_v9  ;;  %v2070_v23 = vld [vmem:[#allocation12 + $0x70] sm:$0xff]  ;;  %v2075_v24 = vld [vmem:[#allocation12 + $0x98] sm:$0xff]  ;;  %v2085_v25 = vld [vmem:[#allocation12 + $0xe8] sm:$0xff]  ;;  %s1541_s27 = sshll.u32 %s541_s0, 4  ;;  %s1529_s25 = scalar_lea.sflag [#allocation6], %s2724_s26  ;;  %s1542_s27 = int_to_ptr.vmem [resolvable:$true] %s1541_s27 }
  0x69   : > { %607 = vmatpush.bf16.msra.mxu0 %v2046_v5  ;;  %682 = vmatpush.bf16.msra.mxu1 %v2053_v7  ;;  %v2059_v26 = vld [vmem:[#allocation12 + $0x18] sm:$0xff]  ;;  %v2069_v27 = vld [vmem:[#allocation12 + $0x68] sm:$0xff]  ;;  %v2074_v28 = vld [vmem:[#allocation12 + $0x90] sm:$0xff] }
  0x6a   : > { %919 = vmatpush.bf16.msra.mxu2 %v2077_v13  ;;  %v2084_v29 = vld [vmem:[#allocation12 + $0xe0] sm:$0xff]  ;;  %v2058_v30 = vld [vmem:[#allocation12 + $0x10] sm:$0xff]  ;;  %v2073_v33 = vld [vmem:[#allocation12 + $0x88] sm:$0xff] }
  0x6b   : > { %v2068_v31 = vld [vmem:[#allocation12 + $0x60] sm:$0xff]  ;;  %v2083_v34 = vld [vmem:[#allocation12 + $0xd8] sm:$0xff]  ;;  %v2057_v36 = vld [vmem:[#allocation12 + $0x8] sm:$0xff] }
  0x6c   : > { %933 = vmatpush.bf16.msra.mxu3 %v2085_v25  ;;  %v2067_v37 = vld [vmem:[#allocation12 + $0x58] sm:$0xff]  ;;  %v2072_v38 = vld [vmem:[#allocation12 + $0x80] sm:$0xff]  ;;  %v2082_v39 = vld [vmem:[#allocation12 + $0xd0] sm:$0xff] }
  0x6d   : > { %608 = vmatpush.bf16.msra.mxu0 %v2045_v10  ;;  %683 = vmatpush.bf16.msra.mxu1 %v2052_v11  ;;  %v2095_v40 = vld [vmem:[#allocation12 + $0x138] sm:$0xff]  ;;  %v2056_v41 = vld [vmem:[#allocation12] sm:$0xff]  ;;  %v2066_v42 = vld [vmem:[#allocation12 + $0x50] sm:$0xff]  ;;  %s1540_s16 = scalar_lea.hbm %s2858_s14, %s2128_s12  ;;  %s2432_s20 = scalar_lea.hbm %s2858_s14, 32 }
  0x6e   : > { %920 = vmatpush.bf16.msra.mxu2 %v2076_v17  ;;  %v2081_v43 = vld [vmem:[#allocation12 + $0xc8] sm:$0xff]  ;;  %v2094_v44 = vld [vmem:[#allocation12 + $0x130] sm:$0xff]  ;;  %v2080_v46 = vld [vmem:[#allocation12 + $0xc0] sm:$0xff]  ;;  %s1543_s19 = sshll.u32 %s1540_s16, 4  ;;  %s1544_s19 = int_to_ptr.hbm [resolvable:$true] %s1543_s19 }
  0x6f   : > { %v2065_v45 = vld [vmem:[#allocation12 + $0x48] sm:$0xff]  ;;  %v2103_v48 = vld [vmem:[#allocation12 + $0x178] sm:$0xff]  ;;  %v2064_v49 = vld [vmem:[#allocation12 + $0x40] sm:$0xff]  ;;  %s2426_s9 = sshra.s32 %s1544_s19, 4  ;;  %s2427_s9 = int_to_ptr.hbm [resolvable:$true] %s2426_s9 }
  0x70   : > { %1719 = vmatmul.msk.bf16.vlgmr.msra.gmra.mxu0 %vm597_vm0, %v2044_v14  ;;  %934 = vmatpush.bf16.msra.mxu3 %v2084_v29  ;;  %v2093_v47 = vld [vmem:[#allocation12 + $0x128] sm:$0xff]  ;;  %v2092_v50 = vld [vmem:[#allocation12 + $0x120] sm:$0xff]  ;;  %v2102_v51 = vld [vmem:[#allocation12 + $0x170] sm:$0xff]  ;;  %s2428_s17 = scalar_lea.hbm %s2427_s9, 16  ;;  %p2433_p2 = scmp.lt.s32.totalorder %s2427_s9, %s2858_s14 }
  0x71   : > { %1041 = vmatpush.bf16.msrb.mxu0 %v2063_v12  ;;  %684 = vmatpush.bf16.msra.mxu1 %v2051_v15  ;;  %v2091_v52 = vld [vmem:[#allocation12 + $0x118] sm:$0xff]  ;;  %v2101_v53 = vld [vmem:[#allocation12 + $0x168] sm:$0xff]  ;;  %v2090_v55 = vld [vmem:[#allocation12 + $0x110] sm:$0xff]  ;;  %p2429_p1 = scmp.ne.s32.totalorder %s2427_s9, %s2428_s17  ;;  %p2434_p10 = scmp.lt.s32.totalorder %s2432_s20, %s2428_s17 }
  0x72   : > { %921 = vmatpush.bf16.msra.mxu2 %v2075_v24  ;;  %v2226_v54 = vld [vmem:[%s2814_s3] ss:$0 sm:$0xff]  ;;  %v2100_v56 = vld [vmem:[#allocation12 + $0x160] sm:$0xff]  ;;  %v2099_v61 = vld [vmem:[#allocation12 + $0x158] sm:$0xff] }
  0x73   : > { %v2089_v60 = vld [vmem:[#allocation12 + $0x108] sm:$0xff]  ;;  %v2088_v63 = vld [vmem:[#allocation12 + $0x100] sm:$0xff]  ;;  %v2098_v0 = vld [vmem:[#allocation12 + $0x150] sm:$0xff]  ;;  %p2430_p4 = pnand %p2429_p1, %p2666_p3  ;;  %p2435_p9 = por %p2434_p10, %p2433_p2 }
  0x74   : > { %935 = vmatpush.bf16.msra.mxu3 %v2083_v34  ;;  %v2227_v62 = vld [vmem:[%s2816_s5] ss:$0 sm:$0xff]  ;;  %v2096_v13 = vld [vmem:[#allocation12 + $0x140] sm:$0xff] }
  0x75   : > { %1042 = vmatpush.bf16.msrb.mxu0 %v2062_v16  ;;  %685 = vmatpush.bf16.msra.mxu1 %v2050_v18  ;;  %v2097_v10 = vld [vmem:[#allocation12 + $0x148] sm:$0xff]  ;;  %p2431_p8 = pneg %p2430_p4 }
  0x76   : > { %922 = vmatpush.bf16.msra.mxu2 %v2074_v28 }
  0x77   : > { %p2436_p11 = pnand %p2435_p9, %p2431_p8 }
  0x78   : > { %1748 = vmatmul.msk.bf16.vlgmr.msra.gmra.mxu1 %vm674_vm1, %v2049_v19  ;;  %936 = vmatpush.bf16.msra.mxu3 %v2082_v39 }
  0x79   : > { %1043 = vmatpush.bf16.msrb.mxu0 %v2061_v20  ;;  %1055 = vmatpush.bf16.msrb.mxu1 %v2071_v21 }
  0x7a   : > { %923 = vmatpush.bf16.msra.mxu2 %v2073_v33 }
  0x7c   : > { %937 = vmatpush.bf16.msra.mxu3 %v2081_v43 }
  0x7d   : > { %1044 = vmatpush.bf16.msrb.mxu0 %v2060_v22  ;;  %1056 = vmatpush.bf16.msrb.mxu1 %v2070_v23 }
  0x7e   : > { %924 = vmatpush.bf16.msra.mxu2 %v2072_v38 }
  0x80   : > { %938 = vmatpush.bf16.msra.mxu3 %v2080_v46 }
  0x81   : > { %1045 = vmatpush.bf16.msrb.mxu0 %v2059_v26  ;;  %1057 = vmatpush.bf16.msrb.mxu1 %v2069_v27 }
  0x82   : > { %1219 = vmatpush.bf16.msrb.mxu2 %v2095_v40 }
  0x84   : > { %1233 = vmatpush.bf16.msrb.mxu3 %v2103_v48 }
  0x85   : > { %1046 = vmatpush.bf16.msrb.mxu0 %v2058_v30  ;;  %1058 = vmatpush.bf16.msrb.mxu1 %v2068_v31 }
  0x86   : > { %1220 = vmatpush.bf16.msrb.mxu2 %v2094_v44 }
  0x88   : > { %1234 = vmatpush.bf16.msrb.mxu3 %v2102_v51 }
  0x89   : > { %1047 = vmatpush.bf16.msrb.mxu0 %v2057_v36  ;;  %1059 = vmatpush.bf16.msrb.mxu1 %v2067_v37 }
  0x8a   : > { %1221 = vmatpush.bf16.msrb.mxu2 %v2093_v47 }
  0x8c   : > { %1235 = vmatpush.bf16.msrb.mxu3 %v2101_v53 }
  0x8d   : > { %1048 = vmatpush.bf16.msrb.mxu0 %v2056_v41  ;;  %1060 = vmatpush.bf16.msrb.mxu1 %v2066_v42 }
  0x8e   : > { %1222 = vmatpush.bf16.msrb.mxu2 %v2092_v50 }
  0x90   : > { %1236 = vmatpush.bf16.msrb.mxu3 %v2100_v56  ;;  %v2111_v56 = vld [vmem:[#allocation13 + $0x38] sm:$0xff] }
  0x91   : > { %1061 = vmatpush.bf16.msrb.mxu1 %v2065_v45 }
  0x92   : > { %1223 = vmatpush.bf16.msrb.mxu2 %v2091_v52 }
  0x94   : > { %1237 = vmatpush.bf16.msrb.mxu3 %v2099_v61  ;;  %v2116_v61 = vld [vmem:[#allocation13 + $0x60] sm:$0xff] }
  0x95   : > { %1062 = vmatpush.bf16.msrb.mxu1 %v2064_v49 }
  0x96   : > { %1224 = vmatpush.bf16.msrb.mxu2 %v2090_v55  ;;  %v2118_v55 = vld [vmem:[#allocation13 + $0x70] sm:$0xff] }
  0x98   : > { %1238 = vmatpush.bf16.msrb.mxu3 %v2098_v0  ;;  %v2115_v0 = vld [vmem:[#allocation13 + $0x58] sm:$0xff] }
  0x99   : > { %1414 = vmatpush.bf16.msra.mxu1 %v2111_v56 }
  0x9a   : > { %1225 = vmatpush.bf16.msrb.mxu2 %v2089_v60  ;;  %v2126_v60 = vld [vmem:[#allocation13 + $0xb0] sm:$0xff] }
  0x9c   : > { %1239 = vmatpush.bf16.msrb.mxu3 %v2097_v10  ;;  %v2122_v10 = vld [vmem:[#allocation13 + $0x90] sm:$0xff] }
  0x9e   : > { %1226 = vmatpush.bf16.msrb.mxu2 %v2088_v63  ;;  %v2125_v63 = vld [vmem:[#allocation13 + $0xa8] sm:$0xff] }
  0xa0   : > { %1240 = vmatpush.bf16.msrb.mxu3 %v2096_v13  ;;  %v2105_v13 = vld [vmem:[#allocation13 + $0x8] sm:$0xff] }
  0xed   : > { %v610_v57 = vpop.f32.mrf.mxu0 }
  0xee   : > { %v611_v58 = vadd.f32 %v2226_v54, %v610_v57  ;;  %v2127_v57 = vld [vmem:[#allocation13 + $0xb8] sm:$0xff] }
  0xf0   : > { %v695_v59 = vrot.slane %v611_v58, 7  ;;  %v2117_v58 = vld [vmem:[#allocation13 + $0x68] sm:$0xff] }
  0xf2   : > { %701 = vst [vmem:[#allocation2] sm:$0xfe] %v695_v59 }
  0xf5   : > { %v612_v1 = vpop.f32.mrf.mxu0  ;;  %v687_v2 = vpop.f32.mrf.mxu1 }
  0xf6   : > { %v613_v3 = vadd.f32 %v2226_v54, %v612_v1  ;;  %v688_v4 = vadd.f32 %v2227_v62, %v687_v2  ;;  %v2119_v54 = vld [vmem:[#allocation13 + $0x78] sm:$0xff]  ;;  %v2108_v2 = vld [vmem:[#allocation13 + $0x20] sm:$0xff] }
  0xf7   : > { %1352 = vmatpush.bf16.msra.mxu0 %v2119_v54  ;;  %v2230_v54 = vld [vmem:[%s2821_s10] ss:$0 sm:$0xff] }
  0xf8   : > { %v696_v5 = vrot.slane %v613_v3, 7  ;;  %v706_v6 = vrot.slane %v688_v4, 7  ;;  %v2124_v3 = vld [vmem:[#allocation13 + $0xa0] sm:$0xff]  ;;  %v2114_v4 = vld [vmem:[#allocation13 + $0x50] sm:$0xff] }
  0xf9   : > { %v715_v7 = vld [vmem:[#allocation2] sm:$0xff] }
  0xfa   : > { %v753_v8 = vld [vmem:[#allocation2] sm:$0xfe]  ;;  %v697_v9 = vsel %vm694_vm3, %v695_v59, %v696_v5  ;;  %703 = vst [vmem:[#allocation2 + $0x20] sm:$0x1] %v696_v5  ;;  %v2110_v59 = vld [vmem:[#allocation13 + $0x30] sm:$0xff]  ;;  %v2107_v5 = vld [vmem:[#allocation13 + $0x18] sm:$0xff] }
  0xfb   : > { %v719_v11 = vpack.c.bf16 %v697_v9, %v715_v7  ;;  %v757_v12 = vpack.c.bf16 %v697_v9, %v753_v8  ;;  %712 = vst [vmem:[#allocation2 + $0x8] sm:$0xfe] %v706_v6  ;;  %v1069_v40 = vld [vmem:[#allocation2] sm:$0xfc]  ;;  %1353 = vmatpush.bf16.msra.mxu0 %v2118_v55  ;;  %1415 = vmatpush.bf16.msra.mxu1 %v2110_v59 }
  0xfc   : > { %v1073_v43 = vpack.c.bf16 %v697_v9, %v1069_v40  ;;  %v2113_v7 = vld [vmem:[#allocation13 + $0x48] sm:$0xff]  ;;  %v2106_v9 = vld [vmem:[#allocation13 + $0x10] sm:$0xff] }
  0xfd   : > { %v689_v14 = vpop.f32.mrf.mxu1  ;;  %1049 = vmatmul.bf16.vlgmr.msrb.gmra.mxu0 %v719_v11  ;;  %v798_v16 = vshll.u32 %v757_v12, 16  ;;  %v796_v24 = vshrl.u32 %v757_v12, 16  ;;  %v2112_v11 = vld [vmem:[#allocation13 + $0x40] sm:$0xff] }
  0xfe   : > { %v690_v15 = vadd.f32 %v2227_v62, %v689_v14  ;;  %v1115_v46 = vrot.slane %v1073_v43, 1  ;;  %v2109_v62 = vld [vmem:[#allocation13 + $0x28] sm:$0xff] }
  0xff   : > { %v800_v21 = vrot.slane %v798_v16, 1  ;;  %1354 = vmatpush.bf16.msra.mxu0 %v2117_v58  ;;  %1416 = vmatpush.bf16.msra.mxu1 %v2109_v62  ;;  %v2121_v14 = vld [vmem:[#allocation13 + $0x88] sm:$0xff]  ;;  %v2104_v16 = vld [vmem:[#allocation13] sm:$0xff] }
 0x100   : > { %v707_v17 = vrot.slane %v690_v15, 7 }
 0x101   : > { %v755_v18 = vld [vmem:[#allocation2 + $0x20] sm:$0x1]  ;;  %v801_v28 = vor.u32 %v800_v21, %v796_v24 }
 0x102   : > { %v708_v19 = vsel %vm694_vm3, %v706_v6, %v707_v17  ;;  %714 = vst [vmem:[#allocation2 + $0x28] sm:$0x1] %v707_v17  ;;  %v759_v20 = vpack.c.bf16 %v755_v18, %v755_v18  ;;  %v716_v22 = vld [vmem:[#allocation2 + $0x8] sm:$0xff]  ;;  %v1071_v37 = vld [vmem:[#allocation2 + $0x20] sm:$0x3]  ;;  %v2123_v6 = vld [vmem:[#allocation13 + $0x98] sm:$0xff] }
 0x103   : > { %v754_v23 = vld [vmem:[#allocation2 + $0x8] sm:$0xfe]  ;;  %v720_v26 = vpack.c.bf16 %v708_v19, %v716_v22  ;;  %v1075_v42 = vpack.c.bf16 %v1071_v37, %v1071_v37  ;;  %1355 = vmatpush.bf16.msra.mxu0 %v2116_v61  ;;  %1417 = vmatpush.bf16.msra.mxu1 %v2108_v2  ;;  %v2120_v17 = vld [vmem:[#allocation13 + $0x80] sm:$0xff] }
 0x104   : > { %v803_v25 = vshll.u32 %v759_v20, 16  ;;  %v758_v27 = vpack.c.bf16 %v708_v19, %v754_v23  ;;  %v1070_v47 = vld [vmem:[#allocation2 + $0x8] sm:$0xfc] }
 0x105   : > { %1063 = vmatmul.bf16.vlgmr.msrb.gmra.mxu1 %v720_v26  ;;  %v1116_v44 = vrot.slane %v1075_v42, 1  ;;  %v1074_v50 = vpack.c.bf16 %v708_v19, %v1070_v47 }
 0x106   : > { %v805_v29 = vrot.slane %v803_v25, 1  ;;  %v810_v30 = vshll.u32 %v758_v27, 16  ;;  %v808_v35 = vshrl.u32 %v758_v27, 16  ;;  %v2228_v27 = vld [vmem:[%s2818_s7] ss:$0 sm:$0xff] }
 0x107   : > { %v1117_v48 = vsel %vm1114_vm5, %v1115_v46, %v1116_v44  ;;  %v1118_v52 = vrot.slane %v1074_v50, 1  ;;  %1356 = vmatpush.bf16.msra.mxu0 %v2115_v0  ;;  %1418 = vmatpush.bf16.msra.mxu1 %v2107_v5 }
 0x108   : > { %v806_v31 = vsel %vm794_vm4, %v801_v28, %v805_v29  ;;  %v812_v34 = vrot.slane %v810_v30, 1  ;;  %v2229_v29 = vld [vmem:[%s2819_s8] ss:$0 sm:$0xff] }
 0x109   : > { %925 = vmatmul.bf16.vlgmr.msra.gmra.mxu2 %v806_v31  ;;  %v756_v32 = vld [vmem:[#allocation2 + $0x28] sm:$0x1] }
 0x10a   : > { %v760_v33 = vpack.c.bf16 %v756_v32, %v756_v32  ;;  %v813_v38 = vor.u32 %v812_v34, %v808_v35  ;;  %v1072_v45 = vld [vmem:[#allocation2 + $0x28] sm:$0x3]  ;;  %1496 = vmatpush.bf16.msra.mxu2 %v2127_v57  ;;  %v2231_v57 = vld [vmem:[%s2822_s11] ss:$0 sm:$0xff] }
 0x10b   : > { %v1076_v49 = vpack.c.bf16 %v1072_v45, %v1072_v45  ;;  %1357 = vmatpush.bf16.msra.mxu0 %v2114_v4  ;;  %1419 = vmatpush.bf16.msra.mxu1 %v2106_v9 }
 0x10c   : > { %v815_v36 = vshll.u32 %v760_v33, 16 }
 0x10d   : > { %v1119_v51 = vrot.slane %v1076_v49, 1 }
 0x10e   : > { %v817_v39 = vrot.slane %v815_v36, 1  ;;  %1497 = vmatpush.bf16.msra.mxu2 %v2126_v60 }
 0x10f   : > { %v1120_v53 = vsel %vm1114_vm5, %v1118_v52, %v1119_v51  ;;  %1358 = vmatpush.bf16.msra.mxu0 %v2113_v7  ;;  %1420 = vmatpush.bf16.msra.mxu1 %v2105_v13 }
 0x110   : > { %v818_v41 = vsel %vm794_vm4, %v813_v38, %v817_v39 }
 0x111   : > { %939 = vmatmul.bf16.vlgmr.msra.gmra.mxu3 %v818_v41 }
 0x112   : > { %1498 = vmatpush.bf16.msra.mxu2 %v2125_v63 }
 0x113   : > { %1359 = vmatpush.bf16.msra.mxu0 %v2112_v11  ;;  %1421 = vmatpush.bf16.msra.mxu1 %v2104_v16 }
 0x116   : > { %1499 = vmatpush.bf16.msra.mxu2 %v2124_v3 }
 0x119   : > { %1227 = vmatmul.bf16.vlgmr.msrb.gmra.mxu2 %v1117_v48 }
 0x11a   : > { %1500 = vmatpush.bf16.msra.mxu2 %v2123_v6 }
 0x11e   : > { %1501 = vmatpush.bf16.msra.mxu2 %v2122_v10 }
 0x121   : > { %1241 = vmatmul.bf16.vlgmr.msrb.gmra.mxu3 %v1120_v53 }
 0x122   : > { %1502 = vmatpush.bf16.msra.mxu2 %v2121_v14 }
 0x126   : > { %1503 = vmatpush.bf16.msra.mxu2 %v2120_v17 }
 0x17a   : > { %v1050_v19 = vpop.f32.mrf.mxu0 }
 0x182   : > { %v1064_v20 = vpop.f32.mrf.mxu1  ;;  %v1052_v30 = vpop.f32.mrf.mxu0 }
 0x18a   : > { %v1066_v33 = vpop.f32.mrf.mxu1 }
 0x18c   : > { %v926_v1 = vpop.f32.mrf.mxu2 }
 0x194   : > { %v940_v8 = vpop.f32.mrf.mxu3  ;;  %v928_v12 = vpop.f32.mrf.mxu2 }
 0x195   : > { %v941_v18 = vadd.f32 %v940_v8, %v926_v1 }
 0x197   : > { %v1051_v21 = vadd.f32 %v1050_v19, %v941_v18 }
 0x199   : > { %v1065_v25 = vadd.f32 %v1064_v20, %v1051_v21 }
 0x19c   : > { %v942_v15 = vpop.f32.mrf.mxu3  ;;  %v1228_v22 = vpop.f32.mrf.mxu2 }
 0x19d   : > { %v943_v24 = vadd.f32 %v942_v15, %v928_v12 }
 0x19f   : > { %v1053_v31 = vadd.f32 %v1052_v30, %v943_v24 }
 0x1a1   : > { %v1067_v38 = vadd.f32 %v1066_v33, %v1053_v31 }
 0x1a4   : > { %v1242_v23 = vpop.f32.mrf.mxu3  ;;  %v1230_v35 = vpop.f32.mrf.mxu2 }
 0x1a5   : > { %v1243_v26 = vadd.f32 %v1242_v23, %v1228_v22 }
 0x1a7   : > { %v1247_v28 = vadd.f32 %v1243_v26, %v1065_v25 }
 0x1a9   : > { %v1253_v32 = vmul.f32 %v2228_v27, %v1247_v28 }
 0x1ab   : > { %v1259_v34 = vadd.f32 %v2229_v29, %v1253_v32 }
 0x1ac   : > { %v1244_v36 = vpop.f32.mrf.mxu3 }
 0x1ad   : > { %v1261_v37 = vmax.f32 %v1259_v34, 0.0  ;;  %v1245_v39 = vadd.f32 %v1244_v36, %v1230_v35 }
 0x1af   : > { %1263 = vst [vmem:[#allocation3 + $0x1] sm:$0xff] %v1261_v37  ;;  %v1248_v40 = vadd.f32 %v1245_v39, %v1067_v38 }
 0x1b1   : > { %v1254_v41 = vmul.f32 %v2228_v27, %v1248_v40 }
 0x1b3   : > { %v1260_v42 = vadd.f32 %v2229_v29, %v1254_v41 }
 0x1b5   : > { %v1262_v43 = vmax.f32 %v1260_v42, 0.0 }
 0x1b6   : > { %v1265_v45 = vld [vmem:[#allocation3] sm:$0xff] }
 0x1b7   : > { %1264 = vst [vmem:[#allocation3 + $0x9] sm:$0xff] %v1262_v43  ;;  %v1286_v44 = vpack.c.bf16 %v1262_v43, %v1261_v37 }
 0x1b9   : > { %1360 = vmatmul.bf16.vlgmr.msra.gmra.mxu0 %v1286_v44 }
 0x1be   : > { %v1266_v46 = vld [vmem:[#allocation3 + $0x8] sm:$0xff] }
 0x1bf   : > { %v1428_v47 = vld [vmem:[#allocation3 + $0x2] sm:$0xff]  ;;  %v1429_v48 = vld [vmem:[#allocation3 + $0xa] sm:$0xff]  ;;  %v1267_v49 = vpack.c.bf16 %v1266_v46, %v1265_v45 }
 0x1c0   : > { %v1430_v50 = vpack.c.bf16 %v1429_v48, %v1428_v47 }
 0x1c1   : > { %1422 = vmatmul.bf16.vlgmr.msra.gmra.mxu1 %v1267_v49 }
 0x1c2   : > { %1504 = vmatmul.bf16.vlgmr.msra.gmra.mxu2 %v1430_v50 }
 0x236   : > { %v1361_v52 = vpop.f32.mrf.mxu0 }
 0x23e   : > { %v1423_v51 = vpop.f32.mrf.mxu1  ;;  %v1363_v61 = vpop.f32.mrf.mxu0 }
 0x23f   : > { %v1424_v53 = vadd.f32 %v1423_v51, %v1361_v52 }
 0x245   : > { %v1505_v55 = vpop.f32.mrf.mxu2 }
 0x246   : > { %v1510_v56 = vadd.f32 %v1505_v55, %v1424_v53  ;;  %v1425_v59 = vpop.f32.mrf.mxu1 }
 0x247   : > { %v1426_v63 = vadd.f32 %v1425_v59, %v1363_v61 }
 0x248   : > { %v1516_v58 = vmul.f32 %v2230_v54, %v1510_v56 }
 0x24a   : > { %v1522_v60 = vadd.f32 %v2231_v57, %v1516_v58 }
 0x24c   : > { %v1524_v62 = vmax.f32 %v1522_v60, 0.0 }
 0x24d   : > { %v1507_v0 = vpop.f32.mrf.mxu2 }
 0x24e   : > { %1526 = vst [vmem:[%s541_s0] sm:$0xff] %v1524_v62  ;;  %v1511_v1 = vadd.f32 %v1507_v0, %v1426_v63 }
 0x250   : > { %v1517_v2 = vmul.f32 %v2230_v54, %v1511_v1 }
 0x252   : > { %v1523_v3 = vadd.f32 %v2231_v57, %v1517_v2 }
 0x254   : > { %v1525_v4 = vmax.f32 %v1523_v3, 0.0 }
 0x256   : > { %1527 = vst [vmem:[%s541_s0 + $0x8] sm:$0xff] %v1525_v4 }
 0x257   : > { %2439 = shalt.err (!%p2436_p11)
}
 0x258   : > { %s2503_s26 = smov 128   ;;  %s2504_s2 = smov 8  }
 0x259   : > { %2149 = dma.vmem_to_hbm [thread:$0]  (%p2666_p3), %s1542_s27, 256, %s1544_s19, %s1529_s25, %s2503_s26, %s2503_s26, %s2504_s2  }
 0x25a PF: > { %s2859_s13 = sld [smem:[#allocation22_spill]]  ;;  %p2861_p12 = scmp.ge.s32.totalorder %s2494_s24, 2 }
 0x25c   : > { %p2172_p13 = pnand %p2861_p12, %p2605_p6 }
 0x25e   : > { %p2173_p0 = pneg %p2172_p13 }
 0x260   : > { %s1558_s23 = sand.u32 1, %s2859_s13  }
 0x261   : > { %s1559_s12 = scalar_lea.sflag [#allocation6], %s1558_s23 }
 0x262   : > { %2477 = dma.done.wait (%p2173_p0), %s1559_s12, 256  }
 0x263   : > { %2479 = vsyncadd (%p2173_p0), %s1559_s12, 4294967040  ;;  %s2862_s24 = sld [smem:[#allocation25_spill]]  ;;  %s2865_s21 = smov %s2486_s22 }
 0x264   : > { %s2863_s0 = sld [smem:[#allocation23_spill]] }
 0x265   : > { %s2864_s23 = sld [smem:[#allocation26_spill]] }
 0x269   : > { %p30_p5 = scmp.ge.s32.totalorder %s2862_s24, 4  }
 0x26a   : > { %s2866_s22 = smov %s2863_s0 }
 0x26b   :  { %32 = sbr.rel (!%p30_p5) target bundleno = 16 (0x10), region = 147 }
 0x270   :  { %1565 = vsyncpa [#allocation5], 1 }
 0x271   :  { %1567 = vsyncpa [#allocation5 + $0x1], 1 }
 0x272   :  { %1568 = vsyncpa [#allocation8], 1 }
 0x273   :  { %1570 = vsyncpa [#allocation8 + $0x1], 1 }
 0x274   :  { %1571 = vsyncpa [#allocation11], 1 }
 0x275   :  { %1572 = vsyncpa [#allocation14], 1 }
 0x276   :  { %1573 = vsyncpa [#allocation6], 1 }
 0x277   :  { %1575 = vsyncpa [#allocation6 + $0x1], 1 }

</bundles_post_ra>
